<compile_context>
chip_gen: v5e
topology: v5e:2x2
jax: 0.10.0
libtpu: 0.0.40
codegen_flags: <defaults>
</compile_context>

<pallas_src>
import jax
import jax.numpy as jnp
from jax.experimental import pallas as pl
from jax.experimental.pallas import tpu as pltpu


def _attention_kernel(g_ref, x_ref, wg_ref, wx_ref, bgx_ref, wpsi_ref,
                      bpsi_ref, out_ref):
    # g_ref: (F_g, TP), x_ref: (F_l, TP)       pixels on lanes (lane-dense)
    # wg_ref: (F_int, F_g), wx_ref: (F_int, F_l)  resident folded conv weights
    # bgx_ref: (F_int, 1) f32   (bg + bx pre-summed)
    # wpsi_ref: (F_int, 1) f32 (VPU path) or (1, F_int) f32 (MXU path)
    # bpsi_ref: (1,) f32 SMEM scalar
    g = g_ref[...]          # stays in the streamed dtype (bf16 feeds the MXU)
    x = x_ref[...]

    # Gate linear: (F_int, TP). Two tiny-K matmuls, f32 accumulation,
    # single fused bias add.
    lin = (jnp.dot(wg_ref[...], g, preferred_element_type=jnp.float32)
           + jnp.dot(wx_ref[...], x, preferred_element_type=jnp.float32)
           + bgx_ref[...])
    p = jnp.maximum(lin, 0.0)                                     # ReLU, f32

    if wpsi_ref.shape[0] == 1:
        # Large F_int: contract on the (otherwise idle) MXU as a third matmul.
        psi_lin = jnp.dot(wpsi_ref[...], p,
                          preferred_element_type=jnp.float32) + bpsi_ref[0]
    else:
        # Small F_int: broadcast multiply + cross-sublane reduce (VPU/XLU).
        psi_lin = (jnp.sum(p * wpsi_ref[...], axis=0, keepdims=True)
                   + bpsi_ref[0])
    psi = jax.nn.sigmoid(psi_lin)                                 # (1, TP) f32

    # Gated output: psi broadcast over channel sublanes, lane-dense store.
    out_ref[...] = (x * psi).astype(out_ref.dtype)


def _fold_bn(w, b, gamma, beta, mean, var, eps=1e-5):
    """Fold eval-mode BatchNorm into a 1x1 conv given as (C_in, C_out) matmul."""
    scale = gamma / jnp.sqrt(var + eps)           # (C_out,)
    w_f = w * scale[None, :]                      # scale output channels
    b_f = (b - mean) * scale + beta
    return w_f, b_f


def _round_up(v, m):
    return (v + m - 1) // m * m


def _hw_config():
    """(tile VMEM budget, scoped vmem_limit_bytes, multi_tensorcore?) keyed on
    the chip generation; conservative fallback if the query is unavailable."""
    budget, vmem_limit, multi_tc = 8 << 20, 32 << 20, False
    try:
        info = pltpu.get_tpu_info()
        vmem = int(getattr(info, "vmem_capacity_bytes", 0) or 0)
        if vmem and vmem <= (64 << 20):
            # v7x-class: 64 MiB physical VMEM per TC, 2 TensorCores/chip.
            budget, vmem_limit, multi_tc = 14 << 20, 48 << 20, True
        elif vmem:
            # v5e/v6e-class: 128 MiB physical VMEM, single TensorCore.
            budget, vmem_limit, multi_tc = 20 << 20, 64 << 20, False
    except Exception:
        pass
    return budget, vmem_limit, multi_tc


def _pick_tile_p(HW, N, F_g, F_l, F_int, io_itemsize, max_tile, budget, multi_tc):
    """Pixel tile (lane dim): as big as the VMEM budget allows, a multiple of
    128 (or the full HW axis); >= 2 steps/core enforced only on multi-TC parts."""
    # Per-pixel VMEM bytes of one grid step: double-buffered streamed tiles
    # (g, x, out) at the I/O dtype + f32 intermediates (gate pre-act (F_int),
    # psi rows, and the gated f32 temp (F_l) before the output cast).
    per_px = 2 * (F_g + 2 * F_l) * io_itemsize + (F_int + F_l + 4) * 4
    tile = min(_round_up(max_tile, 128), _round_up(HW, 128))
    while tile > 128 and tile * per_px > budget:
        tile = _round_up(tile // 2, 128)
    if multi_tc:
        # Only on multi-TensorCore chips (v7x): keep >= 2 steps per core so
        # each core's double-buffer pipeline overlaps.  On single-TC v5e/v6e
        # splitting a fitting tile is pure per-step overhead, so skip it.
        while tile > 128 and N * pl.cdiv(HW, tile) < 4:
            tile = _round_up(tile // 2, 128)
    if HW % 128 != 0 and tile >= HW:
        # Non-lane-aligned HW that fits in one block: use the full axis
        # (block_shape equal to the full array dim is always legal).
        tile = HW
    return int(tile)


def attention_block(g, x, params, *, max_tile_p=4096, io_dtype=None):
    """g: (N, F_g, H, W), x: (N, F_l, H, W). Returns (N, F_l, H, W).

    io_dtype: streamed/compute dtype of the activations.  Defaults to the
    input dtype, so for best performance on v6e/v7x pass bf16 inputs directly
    (cast upstream) — the in-wrapper astype below is only a fallback and costs
    an extra HBM pass when it actually changes the dtype.
    """
    N, F_g, H, W = g.shape
    _, F_l, _, _ = x.shape
    F_int = params["wg"].shape[1]
    HW = H * W

    budget, vmem_limit, multi_tc = _hw_config()

    # --- glue: fold eval-mode BN into the 1x1 convs, lay out for (C, P) ---
    wg_f, bg_f = _fold_bn(params["wg"], params["bg"], params["bn_g_gamma"],
                          params["bn_g_beta"], params["bn_g_mean"], params["bn_g_var"])
    wx_f, bx_f = _fold_bn(params["wx"], params["bx"], params["bn_x_gamma"],
                          params["bn_x_beta"], params["bn_x_mean"], params["bn_x_var"])
    wpsi_f, bpsi_f = _fold_bn(params["wpsi"], params["bpsi"], params["bn_p_gamma"],
                              params["bn_p_beta"], params["bn_p_mean"], params["bn_p_var"])

    compute_dtype = jnp.dtype(io_dtype) if io_dtype is not None else jnp.dtype(x.dtype)
    # Matmul operand weights match the streamed dtype (bf16-native MXU on
    # v6e/v7x, f32 accumulation either way); bias / psi weights stay f32.
    wg_t = wg_f.T.astype(compute_dtype)                       # (F_int, F_g)
    wx_t = wx_f.T.astype(compute_dtype)                       # (F_int, F_l)
    bgx = (bg_f + bx_f).reshape(F_int, 1).astype(jnp.float32)
    if F_int >= 128:
        wpsi_v = wpsi_f.reshape(1, F_int).astype(jnp.float32)  # MXU psi path
    else:
        wpsi_v = wpsi_f.reshape(F_int, 1).astype(jnp.float32)  # VPU/XLU psi path
    bpsi_s = bpsi_f.reshape(1).astype(jnp.float32)             # SMEM scalar

    # --- NCHW -> (N, C, H*W): pure reshape, no transpose / no HBM copy ---
    g3 = g.reshape(N, F_g, HW)
    x3 = x.reshape(N, F_l, HW)
    if g3.dtype != compute_dtype:
        g3 = g3.astype(compute_dtype)   # prefer casting upstream instead
    if x3.dtype != compute_dtype:
        x3 = x3.astype(compute_dtype)
    out_dtype = compute_dtype

    itemsize = jnp.dtype(compute_dtype).itemsize
    # Reserve VMEM for the (double-buffered) resident weights.
    w_bytes = 2 * (F_int * (F_g + F_l) * itemsize + 2 * F_int * 4)
    tile_p = _pick_tile_p(HW, N, F_g, F_l, F_int, itemsize, max_tile_p,
                          max(budget - w_bytes, 2 << 20), multi_tc)

    n_px = pl.cdiv(HW, tile_p)   # ragged last block is masked by Pallas
    grid = (n_px, N)             # pixel axis (most steps) first for megacore

    def px_spec(c):  # batch squeezed, channels on sublanes, pixels on lanes
        return pl.BlockSpec((None, c, tile_p), lambda h, n: (n, 0, h))

    def w_spec(shape):  # full-array weight block, resident across the grid
        return pl.BlockSpec(shape, lambda h, n: (0, 0))

    out3 = pl.pallas_call(
        _attention_kernel,
        out_shape=jax.ShapeDtypeStruct((N, F_l, HW), out_dtype),
        grid_spec=pltpu.PrefetchScalarGridSpec(
            num_scalar_prefetch=0,
            grid=grid,
            in_specs=[
                px_spec(F_g),                      # g tile
                px_spec(F_l),                      # x tile
                w_spec((F_int, F_g)),              # wg^T (folded)
                w_spec((F_int, F_l)),              # wx^T (folded)
                w_spec((F_int, 1)),                # bg + bx
                w_spec(wpsi_v.shape),              # wpsi (folded)
                pl.BlockSpec(memory_space=pltpu.MemorySpace.SMEM),  # bpsi
            ],
            out_specs=px_spec(F_l),
        ),
        compiler_params=pltpu.CompilerParams(
            dimension_semantics=("parallel", "parallel"),
            vmem_limit_bytes=vmem_limit,
        ),
    )(g3, x3, wg_t, wx_t, bgx, wpsi_v, bpsi_s)

    return out3.reshape(N, F_l, H, W)


def _init_params(key, F_g, F_l, F_int):
    ks = jax.random.split(key, 12)
    # Conv weights stored as (C_in, C_out) matmul matrices (1x1 conv).
    params = {
        "wg": jax.random.normal(ks[0], (F_g, F_int), jnp.float32) * 0.2,
        "bg": jax.random.normal(ks[1], (F_int,), jnp.float32) * 0.1,
        "wx": jax.random.normal(ks[2], (F_l, F_int), jnp.float32) * 0.2,
        "bx": jax.random.normal(ks[3], (F_int,), jnp.float32) * 0.1,
        "wpsi": jax.random.normal(ks[4], (F_int, 1), jnp.float32) * 0.2,
        "bpsi": jax.random.normal(ks[5], (1,), jnp.float32) * 0.1,
        # BatchNorm (eval mode) parameters.
        "bn_g_gamma": 1.0 + 0.1 * jax.random.normal(ks[6], (F_int,), jnp.float32),
        "bn_g_beta": 0.1 * jax.random.normal(ks[7], (F_int,), jnp.float32),
        "bn_g_mean": 0.05 * jax.random.normal(ks[8], (F_int,), jnp.float32),
        "bn_g_var": jnp.abs(1.0 + 0.1 * jax.random.normal(ks[9], (F_int,), jnp.float32)),
        "bn_x_gamma": 1.0 + 0.1 * jax.random.normal(ks[10], (F_int,), jnp.float32),
        "bn_x_beta": 0.1 * jax.random.normal(ks[11], (F_int,), jnp.float32),
        "bn_x_mean": jnp.zeros((F_int,), jnp.float32),
        "bn_x_var": jnp.ones((F_int,), jnp.float32),
        "bn_p_gamma": jnp.ones((1,), jnp.float32),
        "bn_p_beta": jnp.zeros((1,), jnp.float32),
        "bn_p_mean": jnp.zeros((1,), jnp.float32),
        "bn_p_var": jnp.ones((1,), jnp.float32),
    }
    return params


def _reference(g, x, params, eps=1e-5):
    """Pure-JAX reference (eval-mode BN), matching the PyTorch module."""
    def conv_bn(inp, w, b, gamma, beta, mean, var):
        y = jnp.einsum("nchw,co->nohw", inp, w) + b[None, :, None, None]
        y = (y - mean[None, :, None, None]) / jnp.sqrt(var[None, :, None, None] + eps)
        return gamma[None, :, None, None] * y + beta[None, :, None, None]

    g1 = conv_bn(g, params["wg"], params["bg"], params["bn_g_gamma"],
                 params["bn_g_beta"], params["bn_g_mean"], params["bn_g_var"])
    x1 = conv_bn(x, params["wx"], params["bx"], params["bn_x_gamma"],
                 params["bn_x_beta"], params["bn_x_mean"], params["bn_x_var"])
    p = jnp.maximum(g1 + x1, 0.0)
    psi = conv_bn(p, params["wpsi"], params["bpsi"], params["bn_p_gamma"],
                  params["bn_p_beta"], params["bn_p_mean"], params["bn_p_var"])
    psi = jax.nn.sigmoid(psi)
    return x * psi


if __name__ == "__main__":
    key = jax.random.PRNGKey(0)
    k_g, k_x, k_p, k_g2, k_x2, k_p3 = jax.random.split(key, 6)

    # Note: channels >= 8 so f32 blocks fill the sublane dim (no 2x vreg waste).
    F_g, F_l, F_int = 8, 8, 16
    N, H, W = 2, 16, 16

    g = jax.random.normal(k_g, (N, F_g, H, W), jnp.float32)
    x = jax.random.normal(k_x, (N, F_l, H, W), jnp.float32)
    params = _init_params(k_p, F_g, F_l, F_int)
    ref = _reference(g, x, params)

    # 1) f32, lane-aligned HW (VPU psi path).
    out = jax.block_until_ready(attention_block(g, x, params))
    assert out.shape == (N, F_l, H, W)
    assert jnp.allclose(out, ref, atol=1e-4, rtol=1e-4), (
        float(jnp.max(jnp.abs(out - ref))))

    # 2) ragged HW (20*20 = 400 px, tile 256): masked partial last block,
    #    no jnp.pad of the inputs and no post-kernel slice.
    H2 = W2 = 20
    g2 = jax.random.normal(k_g2, (N, F_g, H2, W2), jnp.float32)
    x2 = jax.random.normal(k_x2, (N, F_l, H2, W2), jnp.float32)
    out2 = jax.block_until_ready(attention_block(g2, x2, params, max_tile_p=256))
    ref2 = _reference(g2, x2, params)
    assert jnp.allclose(out2, ref2, atol=1e-4, rtol=1e-4), (
        float(jnp.max(jnp.abs(out2 - ref2))))

    # 3) bf16 streaming (inputs pre-cast upstream; halves HBM traffic).
    out_bf = jax.block_until_ready(
        attention_block(g.astype(jnp.bfloat16), x.astype(jnp.bfloat16), params))
    assert out_bf.dtype == jnp.bfloat16
    assert jnp.allclose(out_bf.astype(jnp.float32), ref, atol=1e-1, rtol=1e-1), (
        float(jnp.max(jnp.abs(out_bf.astype(jnp.float32) - ref))))

    # 4) Large F_int (>= 128): psi contraction goes through the MXU.
    params3 = _init_params(k_p3, F_g, F_l, 128)
    out3 = jax.block_until_ready(attention_block(g, x, params3))
    ref3 = _reference(g, x, params3)
    assert jnp.allclose(out3, ref3, atol=5e-4, rtol=5e-4), (
        float(jnp.max(jnp.abs(out3 - ref3))))

    print("KERNEL_OK")
</pallas_src>

<mosaic_0001>
module attributes {stable_mosaic.version = 11 : i64} {
  func.func @_attention_kernel(%arg0: i32, %arg1: i32, %arg2: memref<1x8x256xf32, #tpu.memory_space<vmem>>, %arg3: memref<1x8x256xf32, #tpu.memory_space<vmem>>, %arg4: memref<16x8xf32, #tpu.memory_space<vmem>>, %arg5: memref<16x8xf32, #tpu.memory_space<vmem>>, %arg6: memref<16x1xf32, #tpu.memory_space<vmem>>, %arg7: memref<16x1xf32, #tpu.memory_space<vmem>>, %arg8: memref<1xf32, #tpu.memory_space<smem>>, %arg9: memref<1x8x256xf32, #tpu.memory_space<vmem>>) attributes {dimension_semantics = [#tpu.dimension_semantics<parallel>, #tpu.dimension_semantics<parallel>], iteration_bounds = array<i64: 1, 2>, scalar_prefetch = 0 : i64, scratch_operands = 0 : i64, tpu.core_type = #tpu.core_type<tc>, window_params = [{transform_indices = @transform_0, window_bounds = array<i64: 1, 8, 256>}, {transform_indices = @transform_1, window_bounds = array<i64: 1, 8, 256>}, {pipeline_mode = #tpu.pipeline_mode<synchronous>, transform_indices = @transform_2, window_bounds = array<i64: 16, 8>}, {pipeline_mode = #tpu.pipeline_mode<synchronous>, transform_indices = @transform_3, window_bounds = array<i64: 16, 8>}, {pipeline_mode = #tpu.pipeline_mode<synchronous>, transform_indices = @transform_4, window_bounds = array<i64: 16, 1>}, {pipeline_mode = #tpu.pipeline_mode<synchronous>, transform_indices = @transform_5, window_bounds = array<i64: 16, 1>}, {transform_indices = @transform_6, window_bounds = array<i64: 1>}, {transform_indices = @transform_7, window_bounds = array<i64: 1, 8, 256>}]} {
    %c0 = arith.constant 0 : index
    %c0_0 = arith.constant 0 : index
    %c0_1 = arith.constant 0 : index
    %0 = vector.load %arg2[%c0, %c0_0, %c0_1] : memref<1x8x256xf32, #tpu.memory_space<vmem>>, vector<1x8x256xf32>
    %1 = vector.shape_cast %0 : vector<1x8x256xf32> to vector<8x256xf32>
    %c0_2 = arith.constant 0 : index
    %c0_3 = arith.constant 0 : index
    %c0_4 = arith.constant 0 : index
    %2 = vector.load %arg3[%c0_2, %c0_3, %c0_4] : memref<1x8x256xf32, #tpu.memory_space<vmem>>, vector<1x8x256xf32>
    %3 = vector.shape_cast %2 : vector<1x8x256xf32> to vector<8x256xf32>
    %c0_5 = arith.constant 0 : index
    %c0_6 = arith.constant 0 : index
    %4 = vector.load %arg4[%c0_5, %c0_6] : memref<16x8xf32, #tpu.memory_space<vmem>>, vector<16x8xf32>
    %cst = arith.constant dense<0.000000e+00> : vector<16x256xf32>
    %5 = tpu.matmul %4, %1, %cst {dimension_numbers = #tpu.dot_dimension_numbers<[1], [0], [0], [1], [0, 0, 1, 1], [], []>} : vector<16x8xf32>, vector<8x256xf32>, vector<16x256xf32> -> vector<16x256xf32>
    %c0_7 = arith.constant 0 : index
    %c0_8 = arith.constant 0 : index
    %6 = vector.load %arg5[%c0_7, %c0_8] : memref<16x8xf32, #tpu.memory_space<vmem>>, vector<16x8xf32>
    %cst_9 = arith.constant dense<0.000000e+00> : vector<16x256xf32>
    %7 = tpu.matmul %6, %3, %cst_9 {dimension_numbers = #tpu.dot_dimension_numbers<[1], [0], [0], [1], [0, 0, 1, 1], [], []>} : vector<16x8xf32>, vector<8x256xf32>, vector<16x256xf32> -> vector<16x256xf32>
    %8 = arith.addf %5, %7 : vector<16x256xf32>
    %c0_10 = arith.constant 0 : index
    %c0_11 = arith.constant 0 : index
    %9 = vector.load %arg6[%c0_10, %c0_11] : memref<16x1xf32, #tpu.memory_space<vmem>>, vector<16x1xf32>
    %10 = vector.broadcast %9 : vector<16x1xf32> to vector<16x256xf32>
    %11 = arith.addf %8, %10 : vector<16x256xf32>
    %cst_12 = arith.constant 0.000000e+00 : f32
    %12 = vector.broadcast %cst_12 : f32 to vector<16x256xf32>
    %13 = arith.maximumf %11, %12 : vector<16x256xf32>
    %c0_13 = arith.constant 0 : index
    %c0_14 = arith.constant 0 : index
    %14 = vector.load %arg7[%c0_13, %c0_14] : memref<16x1xf32, #tpu.memory_space<vmem>>, vector<16x1xf32>
    %15 = vector.broadcast %14 : vector<16x1xf32> to vector<16x256xf32>
    %16 = arith.mulf %13, %15 : vector<16x256xf32>
    %cst_15 = arith.constant dense<0.000000e+00> : vector<256xf32>
    %17 = vector.multi_reduction <add>, %16, %cst_15 [0] : vector<16x256xf32> to vector<256xf32>
    %18 = vector.shape_cast %17 : vector<256xf32> to vector<1x256xf32>
    %c0_16 = arith.constant 0 : index
    %19 = memref.load %arg8[%c0_16] : memref<1xf32, #tpu.memory_space<smem>>
    %20 = vector.broadcast %19 : f32 to vector<1x256xf32>
    %21 = arith.addf %18, %20 : vector<1x256xf32>
    %22 = arith.negf %21 : vector<1x256xf32>
    %23 = math.exp %22 : vector<1x256xf32>
    %cst_17 = arith.constant 1.000000e+00 : f32
    %24 = vector.broadcast %cst_17 : f32 to vector<1x256xf32>
    %25 = arith.addf %24, %23 : vector<1x256xf32>
    %26 = arith.divf %24, %25 : vector<1x256xf32>
    %27 = vector.broadcast %26 : vector<1x256xf32> to vector<8x256xf32>
    %28 = arith.mulf %3, %27 : vector<8x256xf32>
    %c0_18 = arith.constant 0 : index
    %c0_19 = arith.constant 0 : index
    %c0_20 = arith.constant 0 : index
    %29 = vector.load %arg9[%c0_18, %c0_19, %c0_20] : memref<1x8x256xf32, #tpu.memory_space<vmem>>, vector<1x8x256xf32>
    %30 = vector.shape_cast %29 : vector<1x8x256xf32> to vector<8x256xf32>
    %31 = vector.shape_cast %28 : vector<8x256xf32> to vector<1x8x256xf32>
    tpu.vector_store %arg9[%c0_18, %c0_19, %c0_20], %31 {strides = array<i32>} : memref<1x8x256xf32, #tpu.memory_space<vmem>>, vector<1x8x256xf32>,
    return
  }
  func.func @transform_0(%arg0: i32, %arg1: i32) -> (i32, i32, i32) {
    %c0_i32 = arith.constant 0 : i32
    %c0_i32_0 = arith.constant 0 : i32
    return %arg1, %c0_i32, %arg0 : i32, i32, i32
  }
  func.func @transform_1(%arg0: i32, %arg1: i32) -> (i32, i32, i32) {
    %c0_i32 = arith.constant 0 : i32
    %c0_i32_0 = arith.constant 0 : i32
    return %arg1, %c0_i32, %arg0 : i32, i32, i32
  }
  func.func @transform_2(%arg0: i32, %arg1: i32) -> (i32, i32) {
    %c0_i32 = arith.constant 0 : i32
    %c0_i32_0 = arith.constant 0 : i32
    %c0_i32_1 = arith.constant 0 : i32
    return %c0_i32, %c0_i32_0 : i32, i32
  }
  func.func @transform_3(%arg0: i32, %arg1: i32) -> (i32, i32) {
    %c0_i32 = arith.constant 0 : i32
    %c0_i32_0 = arith.constant 0 : i32
    %c0_i32_1 = arith.constant 0 : i32
    return %c0_i32, %c0_i32_0 : i32, i32
  }
  func.func @transform_4(%arg0: i32, %arg1: i32) -> (i32, i32) {
    %c0_i32 = arith.constant 0 : i32
    %c0_i32_0 = arith.constant 0 : i32
    %c0_i32_1 = arith.constant 0 : i32
    return %c0_i32, %c0_i32_0 : i32, i32
  }
  func.func @transform_5(%arg0: i32, %arg1: i32) -> (i32, i32) {
    %c0_i32 = arith.constant 0 : i32
    %c0_i32_0 = arith.constant 0 : i32
    %c0_i32_1 = arith.constant 0 : i32
    return %c0_i32, %c0_i32_0 : i32, i32
  }
  func.func @transform_6(%arg0: i32, %arg1: i32) -> i32 {
    %c0_i32 = arith.constant 0 : i32
    %c0_i32_0 = arith.constant 0 : i32
    return %c0_i32 : i32
  }
  func.func @transform_7(%arg0: i32, %arg1: i32) -> (i32, i32, i32) {
    %c0_i32 = arith.constant 0 : i32
    %c0_i32_0 = arith.constant 0 : i32
    return %arg1, %c0_i32, %arg0 : i32, i32, i32
  }
}

</mosaic_0001>

<bundles_post_ra>
// kernel: tpu_custom_call.1
= control target key start
LH: loop header
LB: loop body
LE: loop exit
PB: predicated region body
PF: predicated region fallthrough
CT: control target
= control target key end

     0   :  { %s1114_s0 = inlined_call_operand.vmem [shape: f32[2,8,256], index: 0, kind: input, shape index: {}]   ;;  %s1115_s1 = inlined_call_operand.hbm [shape: f32[2,8,256], index: 1, kind: input, shape index: {}]   ;;  %s1116_s2 = inlined_call_operand.vmem [shape: f32[16,8], index: 2, kind: input, shape index: {}]   ;;  %s1117_s3 = inlined_call_operand.vmem [shape: f32[16,8], index: 3, kind: input, shape index: {}]   ;;  %s1118_s4 = inlined_call_operand.vmem [shape: f32[16,1], index: 4, kind: input, shape index: {}]   ;;  %s1119_s5 = inlined_call_operand.vmem [shape: f32[16,1], index: 5, kind: input, shape index: {}]   ;;  %s1120_s6 = inlined_call_operand.<no memory space> [shape: f32[1], index: 6, kind: input, shape index: {}]   ;;  %s1121_s7 = inlined_call_operand.hbm [shape: f32[2,8,256], index: 7, kind: output, shape index: {}]  }
   0x1   :  { %12 = sst [smem:[#allocation2]] %s1120_s6 }
   0x2   :  { %13 = vsyncpa [#allocation4], 0 }
   0x3   :  { %15 = vsyncpa [#allocation4 + $0x1], 0 }
   0x4   :  { %16 = vsyncpa [#allocation5], 0 }
   0x5   :  { %18 = vsyncpa [#allocation5 + $0x1], 0  ;;  %s945_s26 = smov 0   ;;  %s947_s27 = smov 0  }
   0x6   :  { %s949_s28 = smov 0   ;;  %s951_s29 = smov 0  }
   0x7   :  { %s953_s30 = smov 0   ;;  %s955_s8 = smov 0  }
   0x8 LB: > { %s684_s6 = sadd.s32 4294967295, %s899_s8   ;;  %s685_s9 = sadd.s32 4294967294, %s899_s8   ;;  %s899_s8 = sphi %s955_s8, %s24_s8   ;;  %s895_s30 = sphi %s953_s30, %s1130_s30   ;;  %s891_s29 = sphi %s951_s29, %s1129_s29   ;;  %s887_s28 = sphi %s949_s28, %s1128_s28   ;;  %s883_s27 = sphi %s947_s27, %s1127_s27   ;;  %s879_s26 = sphi %s945_s26, %s1126_s26  }
   0x9   : > { %s33_s10 = sadd.s32 1, %s895_s30  ;;  %s73_s11 = sadd.s32 1, %s887_s28 }
   0xa   : > { %p34_p0 = scmp.ge.s32.totalorder %s33_s10, 2  ;;  %p80_p1 = scmp.ne.s32.totalorder %s887_s28, %s883_s27 }
   0xb   : > { %p81_p2 = scmp.eq.s32.totalorder %s899_s8, 0  ;;  %p86_p3 = scmp.ne.s32.totalorder %s883_s27, %s879_s26 }
   0xc   : > { %s1132_s10 = smov (%p34_p0, %s33_s10), 0  ;;  %p87_p5 = scmp.eq.s32.totalorder %s684_s6, 0 }
   0xd   : > { %p986_p4 = por %p81_p2, %p80_p1  ;;  %s68_s13 = ssub.s32 %s895_s30, %s1132_s10 }
   0xe   : > { %p217_p6 = scmp.eq.s32.totalorder %s684_s6, 1  ;;  %p71_p7 = scmp.eq.s32.totalorder %s68_s13, 0 }
   0xf   : > { %p992_p8 = por %p87_p5, %p86_p3  ;;  %p223_p10 = scmp.eq.s32.totalorder %s685_s9, 1 }
  0x10   : > { %p996_p9 = por %p217_p6, %p80_p1  ;;  %p687_p12 = scmp.ge.s32.totalorder %s899_s8, 2 }
  0x11   : > { %s1001_s16 = scalar_select %p71_p7, %s887_s28, %s73_s11  }
  0x12   : > { %p1003_p11 = por %p223_p10, %p86_p3  ;;  %p726_p13 = scmp.lt.s32.totalorder %s899_s8, 2 }
  0x13   : > { %s271_s18 = sand.u32 1, %s887_s28   ;;  %s711_s20 = sshll.u32 %s895_s30, 4 }
  0x14   : > { %s688_s19 = sshll.u32 %s271_s18, 4  ;;  %s282_s23 = scalar_lea.hbm %s1115_s1, %s711_s20 }
  0x15   : > { %s275_s24 = scalar_lea.vmem [#allocation3], %s688_s19  ;;  %s284_s6 = sshll.u32 %s282_s23, 4  ;;  %s285_s6 = int_to_ptr.hbm [resolvable:$true] %s284_s6 }
  0x16   : > { %s286_s25 = sshll.u32 %s275_s24, 4  ;;  %p719_p0 = pnand %p726_p13, %p986_p4  ;;  %s287_s25 = int_to_ptr.vmem [resolvable:$true] %s286_s25 }
  0x17   : > { %p691_p1 = scmp.ge.s32.totalorder %s899_s8, 1  ;;  %p291_p2 = scmp.lt.s32.totalorder %s899_s8, 3 }
  0x18   : > { %s272_s9 = scalar_lea.sflag [#allocation4], %s271_s18 }
  0x19   : > { %721 = dma.hbm_to_vmem [thread:$0]  (!%p719_p0), %s285_s6, 256, %s287_s25, %s272_s9  }
  0x1a   : > { %p292_p3 = pnand %p691_p1, %p291_p2 }
  0x1b   : > { %s1019_s11 = sand.u32 (!%p292_p3), 1, %s883_s27  }
  0x1c   : > { %295 = sbr.rel (%p292_p3) target bundleno = 240 (0xf0), region = 48  ;;  %s692_s13 = sshll.u32 (!%p292_p3), %s1019_s11, 4 }
  0x1d   : > { %s298_s19 = scalar_lea.sflag (!%p292_p3), [#allocation4], %s1019_s11  ;;  %s301_s20 = scalar_lea.vmem (!%p292_p3), [#allocation3], %s692_s13 }
  0x21   : > { %870 = dma.done.wait (%p992_p8), %s298_s19, 256  }
  0x22   : > { %872 = vsyncadd (%p992_p8), %s298_s19, 4294967040  ;;  %p343_p4 = scmp.lt.s32.totalorder %s891_s29, 1  ;;  %v901_v0 = vmov 0   ;;  %vm362_vm0 = vcmask 64512   ;;  %v358_v3 = vld [vmem:[%s1116_s2] sm:$0xff]  ;;  %v1039_v5 = vld [vmem:[%s301_s20 + $0x8] sm:$0xff] }
  0x23   : > { %777 = vset.pattern.permute.xlu0 %v901_v0  ;;  %778 = vset.pattern.permute.xlu1 %v901_v0  ;;  %v1037_v4 = vld [vmem:[%s301_s20] sm:$0xff]  ;;  %v359_v9 = vld [vmem:[%s1116_s2 + $0x8] sm:$0xff]  ;;  %s517_s9 = sld [smem:[#allocation2]]  ;;  %s713_s19 = sshll.u32 %s891_s29, 4 }
  0x24   : > { %s344_s12 = scalar_select %p343_p4, %s891_s29, 1  ;;  %v360_v6 = vld [vmem:[%s1117_s3] sm:$0xff]  ;;  %384 = vmatpush.msra.mxu0 %v1037_v4  ;;  %407 = vmatpush.msra.mxu1 %v1039_v5  ;;  %v361_v10 = vld [vmem:[%s1117_s3 + $0x8] sm:$0xff] }
  0x25   : > { %v467_v7 = vld [vmem:[%s1118_s4] sm:$0xff]  ;;  %696 = vmatmul.msk.f32.vlgmr.msra.gmra.mxu0 %vm362_vm0, %v360_v6  ;;  %698 = vmatmul.msk.f32.vlgmr.msra.gmra.mxu1 %vm362_vm0, %v360_v6  ;;  %v468_v11 = vld [vmem:[%s1118_s4 + $0x8] sm:$0xff]  ;;  %s577_s20 = scalar_lea.hbm %s1121_s7, %s713_s19  ;;  %s341_s29 = scalar_lea.vmem [#allocation6], %s692_s13 }
  0x26   : > { %s712_s18 = sshll.u32 %s344_s12, 4  ;;  %v487_v8 = vld [vmem:[%s1119_s5] sm:$0xff]  ;;  %471 = vperm.xlu0 %777, %v467_v7   ;;  %v488_v12 = vld [vmem:[%s1119_s5 + $0x8] sm:$0xff]  ;;  %s579_s21 = sshll.u32 %s341_s29, 4  ;;  %s580_s21 = int_to_ptr.vmem [resolvable:$true] %s579_s21 }
  0x27   : > { %s350_s23 = scalar_lea.vmem %s1114_s0, %s712_s18  ;;  %491 = vperm.xlu1 %778, %v487_v8   ;;  %s581_s22 = sshll.u32 %s577_s20, 4  ;;  %s582_s22 = int_to_ptr.hbm [resolvable:$true] %s581_s22 }
  0x28   : > { %v354_v1 = vld [vmem:[%s350_s23] sm:$0xff]  ;;  %v355_v2 = vld [vmem:[%s350_s23 + $0x8] sm:$0xff]  ;;  %s564_s23 = scalar_lea.sflag [#allocation5], %s1019_s11  ;;  %s831_s24 = sshra.s32 %s582_s22, 4  ;;  %s832_s24 = int_to_ptr.hbm [resolvable:$true] %s831_s24 }
  0x29   : > { %436 = vmatpush.msra.mxu2 %v354_v1  ;;  %459 = vmatpush.msra.mxu3 %v355_v2  ;;  %v518_v53 = vstv %s517_s9  ;;  %s833_s25 = scalar_lea.hbm %s832_s24, 16  ;;  %s837_s6 = scalar_lea.hbm %s1121_s7, 32 }
  0x2a   : > { %700 = vmatmul.msk.f32.vlgmr.msra.gmra.mxu2 %vm362_vm0, %v358_v3  ;;  %702 = vmatmul.msk.f32.vlgmr.msra.gmra.mxu3 %vm362_vm0, %v358_v3  ;;  %p834_p5 = scmp.ne.s32.totalorder %s832_s24, %s833_s25  ;;  %p838_p8 = scmp.lt.s32.totalorder %s832_s24, %s1121_s7 }
  0x2b   : > { %p839_p10 = scmp.lt.s32.totalorder %s837_s6, %s833_s25 }
  0x2c   : > { %p835_p6 = pnand %p834_p5, %p996_p9 }
  0x2d   : > { %697 = vmatmul.msk.f32.gmra.mxu0 %vm362_vm0, %v361_v10  ;;  %699 = vmatmul.msk.f32.gmra.mxu1 %vm362_vm0, %v361_v10  ;;  %p840_p13 = por %p839_p10, %p838_p8 }
  0x2e   : > { %476 = vperm.xlu0 %777, %v468_v11   ;;  %p836_p7 = pneg %p835_p6 }
  0x2f   : > { %496 = vperm.xlu1 %778, %v488_v12  }
  0x30   : > { %p841_p0 = pnand %p840_p13, %p836_p7 }
  0x32   : > { %701 = vmatmul.msk.f32.gmra.mxu2 %vm362_vm0, %v359_v9  ;;  %703 = vmatmul.msk.f32.gmra.mxu3 %vm362_vm0, %v359_v9 }
  0x98   : > { %v472_v15 = vpop.permute.xlu0 %471 }
  0x99   : > { %v492_v20 = vpop.permute.xlu1 %491 }
  0xa0   : > { %v477_v29 = vpop.permute.xlu0 %476 }
  0xa1   : > { %v497_v36 = vpop.permute.xlu1 %496 }
  0xa2   : > { %v386_v13 = vpop.f32.mrf.mxu0  ;;  %v409_v14 = vpop.f32.mrf.mxu1 }
  0xaa   : > { %v389_v21 = vpop.f32.mrf.mxu0  ;;  %v412_v22 = vpop.f32.mrf.mxu1 }
  0xad   : > { %v438_v16 = vpop.f32.mrf.mxu2  ;;  %v461_v17 = vpop.f32.mrf.mxu3 }
  0xae   : > { %v439_v18 = vadd.f32 %v438_v16, %v386_v13  ;;  %v462_v19 = vadd.f32 %v461_v17, %v409_v14 }
  0xb0   : > { %v479_v23 = vadd.f32 %v472_v15, %v439_v18  ;;  %v480_v24 = vadd.f32 %v472_v15, %v462_v19 }
  0xb2   : > { %v483_v30 = vmax.f32 %v479_v23, 0.0  ;;  %v484_v31 = vmax.f32 %v480_v24, 0.0 }
  0xb4   : > { %v499_v37 = vmul.f32 %v492_v20, %v483_v30  ;;  %v500_v38 = vmul.f32 %v492_v20, %v484_v31 }
  0xb5   : > { %v441_v25 = vpop.f32.mrf.mxu2  ;;  %v464_v26 = vpop.f32.mrf.mxu3 }
  0xb6   : > { %v442_v27 = vadd.f32 %v441_v25, %v389_v21  ;;  %v465_v28 = vadd.f32 %v464_v26, %v412_v22 }
  0xb8   : > { %v481_v32 = vadd.f32 %v477_v29, %v442_v27  ;;  %v482_v33 = vadd.f32 %v477_v29, %v465_v28 }
  0xba   : > { %v485_v34 = vmax.f32 %v481_v32, 0.0  ;;  %v486_v35 = vmax.f32 %v482_v33, 0.0 }
  0xbc   : > { %v501_v39 = vmul.f32 %v497_v36, %v485_v34  ;;  %v502_v40 = vmul.f32 %v497_v36, %v486_v35 }
  0xbe   : > { %v503_v41 = vadd.f32 %v501_v39, %v499_v37  ;;  %v510_v42 = vadd.f32 %v502_v40, %v500_v38 }
  0xc0   : > { %v504_v43 = vrot.slane %v503_v41, 4  ;;  %v511_v44 = vrot.slane %v510_v42, 4 }
  0xc2   : > { %v505_v45 = vadd.f32 %v504_v43, %v503_v41  ;;  %v512_v46 = vadd.f32 %v511_v44, %v510_v42 }
  0xc4   : > { %v506_v47 = vrot.slane %v505_v45, 2  ;;  %v513_v48 = vrot.slane %v512_v46, 2 }
  0xc6   : > { %v507_v49 = vadd.f32 %v506_v47, %v505_v45  ;;  %v514_v50 = vadd.f32 %v513_v48, %v512_v46 }
  0xc8   : > { %v508_v51 = vrot.slane %v507_v49, 1  ;;  %v515_v52 = vrot.slane %v514_v50, 1 }
  0xca   : > { %v509_v54 = vadd.f32 %v508_v51, %v507_v49  ;;  %v516_v55 = vadd.f32 %v515_v52, %v514_v50 }
  0xcc   : > { %v519_v56 = vadd.f32 %v518_v53, %v509_v54  ;;  %v520_v57 = vadd.f32 %v518_v53, %v516_v55 }
  0xce   : > { %v704_v58 = vmul.f32 -1.442695, %v519_v56  ;;  %v705_v59 = vmul.f32 -1.442695, %v520_v57 }
  0xd0   : > { %779 = vpow2.f32 %v704_v58 }
  0xd1   : > { %781 = vpow2.f32 %v705_v59 }
  0xd6   : > { %v780_v60 = vpop.eup %779 }
  0xd7   : > { %v782_v61 = vpop.eup %781  ;;  %v527_v62 = vadd.f32 1.0, %v780_v60 }
  0xd8   : > { %v528_v63 = vadd.f32 1.0, %v782_v61 }
  0xd9   : > { %783 = vrcp.f32 %v527_v62  ;;  %v540_v7 = vand.u32 2147483648, %v527_v62  ;;  %v538_v10 = vand.u32 2147483647, %v527_v62  ;;  %vm534_vm3 = vweird.f32 %v527_v62 }
  0xda   : > { %785 = vrcp.f32 %v528_v63  ;;  %v555_v11 = vand.u32 2147483648, %v528_v63  ;;  %v553_v13 = vand.u32 2147483647, %v528_v63  ;;  %vm549_vm5 = vweird.f32 %v528_v63 }
  0xdb   : > { %v541_v15 = vor.u32 1.1754944e-38, %v540_v7  ;;  %vm539_vm6 = vcmp.eq.f32.partialorder %v538_v10, 8.507059e+37 }
  0xdc   : > { %v556_v18 = vor.u32 1.1754944e-38, %v555_v11  ;;  %vm554_vm8 = vcmp.eq.f32.partialorder %v553_v13, 8.507059e+37 }
  0xdf   : > { %v784_v0 = vpop.eup %783 }
  0xe0   : > { %v786_v1 = vpop.eup %785  ;;  %v530_v2 = vmul.f32 %v784_v0, %v527_v62  ;;  %vm535_vm1 = vweird.f32 %v784_v0 }
  0xe1   : > { %v545_v3 = vmul.f32 %v786_v1, %v528_v63  ;;  %vm550_vm2 = vweird.f32 %v786_v1  ;;  %vm536_vm4 = vmor %vm534_vm3, %vm535_vm1 }
  0xe2   : > { %v531_v6 = vsub.f32 1.0, %v530_v2  ;;  %vm551_vm7 = vmor %vm549_vm5, %vm550_vm2 }
  0xe3   : > { %v546_v8 = vsub.f32 1.0, %v545_v3 }
  0xe4   : > { %v532_v9 = vmul.f32 %v784_v0, %v531_v6 }
  0xe5   : > { %v547_v12 = vmul.f32 %v786_v1, %v546_v8 }
  0xe6   : > { %v533_v14 = vadd.f32 %v784_v0, %v532_v9 }
  0xe7   : > { %v548_v16 = vadd.f32 %v786_v1, %v547_v12 }
  0xe8   : > { %v537_v17 = vsel %vm536_vm4, %v784_v0, %v533_v14 }
  0xe9   : > { %v542_v19 = vsel %vm539_vm6, %v541_v15, %v537_v17  ;;  %v552_v20 = vsel %vm551_vm7, %v786_v1, %v548_v16 }
  0xea   : > { %v557_v21 = vsel %vm554_vm8, %v556_v18, %v552_v20  ;;  %v559_v22 = vmul.f32 %v542_v19, %v1037_v4 }
  0xeb   : > { %v560_v23 = vmul.f32 %v557_v21, %v1039_v5 }
  0xec   : > { %561 = vst [vmem:[%s341_s29] sm:$0xff] %v559_v22 }
  0xed   : > { %562 = vst [vmem:[%s341_s29 + $0x8] sm:$0xff] %v560_v23 }
  0xee   : > { %844 = shalt.err (!%p841_p0)
}
  0xef   : > { %716 = dma.vmem_to_hbm [thread:$0]  (%p996_p9), %s580_s21, 256, %s582_s22, %s564_s23  }
  0xf0 PF: > { %s593_s11 = sand.u32 1, %s879_s26   ;;  %p723_p1 = pnand %p687_p12, %p1003_p11 }
  0xf1   : > { %s594_s12 = scalar_lea.sflag [#allocation5], %s593_s11 }
  0xf2   : > { %p724_p2 = pneg %p723_p1 }
  0xf4   : > { %874 = dma.done.wait (%p724_p2), %s594_s12, 256  }
  0xf5   : > { %876 = vsyncadd (%p724_p2), %s594_s12, 4294967040  ;;  %s24_s8 = sadd.s32 1, %s899_s8   ;;  %s1126_s26 = smov %s883_s27 }
  0xf6   : > { %p21_p3 = scmp.ge.s32.totalorder %s24_s8, 4   ;;  %s1127_s27 = smov %s887_s28 }
  0xf7   : > { %s1128_s28 = smov %s1001_s16  ;;  %s1129_s29 = smov %s895_s30 }
  0xf8   : > { %s1130_s30 = smov %s1132_s10  ;;  %23 = sbr.rel (!%p21_p3) target bundleno = 8 (0x8), region = 96 }
  0xfd   :  { %600 = vsyncpa [#allocation4], 1 }
  0xfe   :  { %602 = vsyncpa [#allocation4 + $0x1], 1 }
  0xff   :  { %603 = vsyncpa [#allocation5], 1 }
 0x100   :  { %605 = vsyncpa [#allocation5 + $0x1], 1 }

</bundles_post_ra>
